<compile_context>
chip_gen: v6e
topology: v6e:2x2x1
jax: 0.10.0
libtpu: 0.0.40
codegen_flags: <defaults>
</compile_context>

<pallas_src>
import functools

import jax
import jax.numpy as jnp
from jax.experimental import pallas as pl
from jax.experimental.pallas import tpu as pltpu


def densenet_kernel(xt_ref, w1_ref, b1_ref, whh_ref, whx_ref, bh_ref, w3h2_ref, o_ref):
    """One batch tile; batch on the lane axis.

    xt_ref   : [2, TB]        transposed input tile (pipelined per grid step)
    w1_ref   : [hid, 2]       fc1 weights                    (compute dtype)
    b1_ref   : [hid, 1]       fc1 bias                       (compute dtype)
    whh_ref  : [hid+1, hid]   fused fc2/fc3 h1-projection    (compute dtype)
    whx_ref  : [hid+1, 2]     fused fc2/fc3 x-projection     (compute dtype)
    bh_ref   : [hid+1, 1]     fused fc2/fc3 biases           (f32, added to f32 acc)
    w3h2_ref : [1, hid]       fc3 weights acting on h2       (compute dtype)
    o_ref    : [1, TB]        sigmoid output (lane-dense)
    """
    hid = whh_ref.shape[1]
    cdt = w1_ref.dtype                      # f32, or bf16 on v6e/v7x

    xt = xt_ref[...].astype(cdt)            # [2, TB]
    w1 = w1_ref[...]                        # [hid, 2]

    # fc1 (K=2): VPU broadcast-FMA + EUP tanh.  Only hid rows of FMA work.
    h1 = jnp.tanh(w1[:, 0:1] * xt[0:1, :]
                  + w1[:, 1:2] * xt[1:2, :]
                  + b1_ref[...])                               # [hid, TB]

    # fc2/fc3: h1- and x-projections both on the MXU, f32 accumulation.
    h1p = (jnp.dot(whh_ref[...], h1, preferred_element_type=jnp.float32)
           + jnp.dot(whx_ref[...], xt, preferred_element_type=jnp.float32)
           + bh_ref[...])                                      # [hid+1, TB] f32

    h2 = jnp.tanh(h1p[:hid, :].astype(cdt))                    # [hid, TB]

    z = (h1p[hid:hid + 1, :]
         + jnp.dot(w3h2_ref[...], h2, preferred_element_type=jnp.float32))  # [1, TB]

    o_ref[...] = jax.nn.sigmoid(z).astype(o_ref.dtype)


def prepare_params(params, *, dtype=jnp.float32):
    """One-time conversion of PyTorch-layout params (W: [out, in]) to the fused
    Pallas layout.  dtype=jnp.bfloat16 enables the bf16 elementwise path
    (recommended on v6e/v7x only); MXU accumulation stays f32 either way."""
    w1, b1 = params["w1"], params["b1"]          # [hid, 2], [hid]
    w2, b2 = params["w2"], params["b2"]          # [hid, 2+hid], [hid]
    w3, b3 = params["w3"], params["b3"]          # [1, 2+2*hid], [1]
    hid = w1.shape[0]

    whh = jnp.concatenate([w2[:, 2:], w3[:, 2:2 + hid]], axis=0)   # [hid+1, hid]
    whx = jnp.concatenate([w2[:, :2], w3[:, :2]], axis=0)          # [hid+1, 2]
    bh = jnp.concatenate([b2, b3], axis=0).reshape(hid + 1, 1)     # [hid+1, 1]

    return {
        "w1": w1.astype(dtype),
        "b1": b1.reshape(hid, 1).astype(dtype),
        "whh": whh.astype(dtype),
        "whx": whx.astype(dtype),
        "bh": bh.astype(jnp.float32),            # added to f32 MXU accumulators
        "w3h2": w3[:, 2 + hid:].astype(dtype),   # [1, hid]
    }


def _round_up(n, m):
    return ((n + m - 1) // m) * m


def _forward_t_impl(xt, prepped, tile_b):
    """xt: [2, B] (batch already on the lane axis).  Returns [B, 1] float32."""
    assert tile_b % 128 == 0, "tile_b must be a multiple of 128 (lane width)"
    B = xt.shape[1]
    hid = prepped["whh"].shape[1]

    if B <= 256:
        TB, num_tiles = B, 1                 # tiny batch: one full-array block
    else:
        # >=2 grid steps so v7x can shard the parallel axis across both
        # TensorCores; tile is a lane multiple (128) capped at tile_b.
        TB = min(tile_b, _round_up(pl.cdiv(B, 2), 128))
        num_tiles = pl.cdiv(B, TB)

    # NOTE: no padding -- Pallas handles the ragged last tile.  Garbage lanes in
    # the padded part of the VMEM block stay per-lane through tanh/sigmoid and
    # are discarded by the [:B] slice below.  Do NOT add lane-axis (batch)
    # reductions inside the kernel without restoring explicit padding.

    # VMEM budget: intermediates (~(3*hid+6) f32 rows of TB) + double-buffered
    # x/out tiles + weights, 2x headroom, clamped to [32 MiB, 64 MiB] (v7x cap).
    est = (3 * hid + 6) * TB * 4 + 2 * 3 * TB * 4 + (hid + 1) * (hid + 8) * 4
    vmem_limit = int(min(max(2 * est, 32 << 20), 64 << 20))

    out = pl.pallas_call(
        densenet_kernel,
        out_shape=jax.ShapeDtypeStruct((1, B), jnp.float32),
        grid=(num_tiles,),
        in_specs=[
            pl.BlockSpec((2, TB), lambda i: (0, i)),              # x tile: pipelined per step
            pl.BlockSpec(prepped["w1"].shape, lambda i: (0, 0)),  # weights: constant block,
            pl.BlockSpec(prepped["b1"].shape, lambda i: (0, 0)),  #   DMA'd once and kept
            pl.BlockSpec(prepped["whh"].shape, lambda i: (0, 0)), #   resident in VMEM
            pl.BlockSpec(prepped["whx"].shape, lambda i: (0, 0)),
            pl.BlockSpec(prepped["bh"].shape, lambda i: (0, 0)),
            pl.BlockSpec(prepped["w3h2"].shape, lambda i: (0, 0)),
        ],
        out_specs=pl.BlockSpec((1, TB), lambda i: (0, i)),         # lane-dense output slab
        compiler_params=pltpu.CompilerParams(
            dimension_semantics=("parallel",),   # megacore split on v7x; free elsewhere
            vmem_limit_bytes=vmem_limit,
        ),
    )(xt, prepped["w1"], prepped["b1"], prepped["whh"], prepped["whx"],
      prepped["bh"], prepped["w3h2"])

    return out[0, :B].reshape(B, 1)


@functools.partial(jax.jit, static_argnames=("tile_b",))
def densenet_forward_t(xt, prepped, *, tile_b=8192):
    """Forward for callers that keep x in [2, B] layout (no transpose pass)."""
    return _forward_t_impl(xt, prepped, tile_b)


@functools.partial(jax.jit, static_argnames=("tile_b",))
def densenet_forward(x, prepped, *, tile_b=8192):
    """x: [B, 2] float32 (PyTorch layout).  prepped: output of prepare_params().

    Does one XLA transpose to the lane-friendly [2, B] layout; callers that can
    keep the input in [2, B] should use densenet_forward_t and skip it."""
    return _forward_t_impl(x.T, prepped, tile_b)


def init_params(key, hid):
    """Deterministic init mimicking nn.Linear default (uniform +/- 1/sqrt(fan_in))."""
    ks = jax.random.split(key, 6)

    def lin(kw, kb, fan_in, fan_out):
        bound = 1.0 / jnp.sqrt(fan_in)
        w = jax.random.uniform(kw, (fan_out, fan_in), jnp.float32, -bound, bound)
        b = jax.random.uniform(kb, (fan_out,), jnp.float32, -bound, bound)
        return w, b

    w1, b1 = lin(ks[0], ks[1], 2, hid)
    w2, b2 = lin(ks[2], ks[3], 2 + hid, hid)
    w3, b3 = lin(ks[4], ks[5], 2 + hid + hid, 1)
    return {"w1": w1, "b1": b1, "w2": w2, "b2": b2, "w3": w3, "b3": b3}


def reference_forward(x, p):
    """Plain-JAX reference matching the PyTorch forward exactly."""
    h1 = jnp.tanh(x @ p["w1"].T + p["b1"])
    h2 = jnp.tanh(jnp.concatenate([x, h1], axis=1) @ p["w2"].T + p["b2"])
    z = jnp.concatenate([x, h1, h2], axis=1) @ p["w3"].T + p["b3"]
    return jax.nn.sigmoid(z)


if __name__ == "__main__":
    hid = 32
    key = jax.random.PRNGKey(0)
    k_x, k_x2, k_p = jax.random.split(key, 3)

    params = init_params(k_p, hid)
    prepped = prepare_params(params)          # one-time weight fusion / layout prep

    # Small single-tile case (B=8).
    x = jax.random.normal(k_x, (8, 2), jnp.float32)
    out = jax.block_until_ready(densenet_forward(x, prepped))
    ref = reference_forward(x, params)
    assert out.shape == (8, 1)
    assert jnp.allclose(out, ref, atol=1e-4, rtol=1e-4), float(jnp.max(jnp.abs(out - ref)))

    # Multi-tile case: 3 grid steps with a ragged (unpadded) last tile (B=300, TB=128).
    x2 = jax.random.normal(k_x2, (300, 2), jnp.float32)
    out2 = jax.block_until_ready(densenet_forward(x2, prepped, tile_b=128))
    ref2 = reference_forward(x2, params)
    assert out2.shape == (300, 1)
    assert jnp.allclose(out2, ref2, atol=1e-4, rtol=1e-4), float(jnp.max(jnp.abs(out2 - ref2)))

    # Default tiling path (TB chosen so there are >=2 parallel grid steps),
    # plus the pre-transposed entry point (no wrapper x.T pass).
    out3 = jax.block_until_ready(densenet_forward_t(x2.T, prepped))
    assert out3.shape == (300, 1)
    assert jnp.allclose(out3, ref2, atol=1e-4, rtol=1e-4), float(jnp.max(jnp.abs(out3 - ref2)))

    # Optional bf16 elementwise path (intended for v6e/v7x; f32 MXU accumulation kept).
    prepped_bf16 = prepare_params(params, dtype=jnp.bfloat16)
    out_bf16 = jax.block_until_ready(densenet_forward(x2, prepped_bf16, tile_b=128))
    assert jnp.allclose(out_bf16, ref2, atol=3e-2, rtol=0.0), \
        float(jnp.max(jnp.abs(out_bf16 - ref2)))

    print("KERNEL_OK")
</pallas_src>

<mosaic_0001>
module attributes {stable_mosaic.version = 11 : i64} {
  func.func @densenet_kernel(%arg0: i32, %arg1: memref<2x8xf32, #tpu.memory_space<vmem>>, %arg2: memref<32x2xf32, #tpu.memory_space<vmem>>, %arg3: memref<32x1xf32, #tpu.memory_space<vmem>>, %arg4: memref<33x32xf32, #tpu.memory_space<vmem>>, %arg5: memref<33x2xf32, #tpu.memory_space<vmem>>, %arg6: memref<33x1xf32, #tpu.memory_space<vmem>>, %arg7: memref<1x32xf32, #tpu.memory_space<vmem>>, %arg8: memref<1x8xf32, #tpu.memory_space<vmem>>) attributes {dimension_semantics = [#tpu.dimension_semantics<parallel>], iteration_bounds = array<i64: 1>, scalar_prefetch = 0 : i64, scratch_operands = 0 : i64, tpu.core_type = #tpu.core_type<tc>, window_params = [{transform_indices = @transform_0, window_bounds = array<i64: 2, 8>}, {pipeline_mode = #tpu.pipeline_mode<synchronous>, transform_indices = @transform_1, window_bounds = array<i64: 32, 2>}, {pipeline_mode = #tpu.pipeline_mode<synchronous>, transform_indices = @transform_2, window_bounds = array<i64: 32, 1>}, {pipeline_mode = #tpu.pipeline_mode<synchronous>, transform_indices = @transform_3, window_bounds = array<i64: 33, 32>}, {pipeline_mode = #tpu.pipeline_mode<synchronous>, transform_indices = @transform_4, window_bounds = array<i64: 33, 2>}, {pipeline_mode = #tpu.pipeline_mode<synchronous>, transform_indices = @transform_5, window_bounds = array<i64: 33, 1>}, {pipeline_mode = #tpu.pipeline_mode<synchronous>, transform_indices = @transform_6, window_bounds = array<i64: 1, 32>}, {transform_indices = @transform_7, window_bounds = array<i64: 1, 8>}]} {
    %c0 = arith.constant 0 : index
    %c0_0 = arith.constant 0 : index
    %0 = vector.load %arg1[%c0, %c0_0] : memref<2x8xf32, #tpu.memory_space<vmem>>, vector<2x8xf32>
    %c0_1 = arith.constant 0 : index
    %c0_2 = arith.constant 0 : index
    %1 = vector.load %arg2[%c0_1, %c0_2] : memref<32x2xf32, #tpu.memory_space<vmem>>, vector<32x2xf32>
    %2 = vector.extract_strided_slice %1 {offsets = [0, 0], sizes = [32, 1], strides = [1, 1]} : vector<32x2xf32> to vector<32x1xf32>
    %3 = vector.extract_strided_slice %0 {offsets = [0, 0], sizes = [1, 8], strides = [1, 1]} : vector<2x8xf32> to vector<1x8xf32>
    %4 = vector.broadcast %2 : vector<32x1xf32> to vector<32x8xf32>
    %5 = vector.broadcast %3 : vector<1x8xf32> to vector<32x8xf32>
    %6 = arith.mulf %4, %5 : vector<32x8xf32>
    %7 = vector.extract_strided_slice %1 {offsets = [0, 1], sizes = [32, 1], strides = [1, 1]} : vector<32x2xf32> to vector<32x1xf32>
    %8 = vector.extract_strided_slice %0 {offsets = [1, 0], sizes = [1, 8], strides = [1, 1]} : vector<2x8xf32> to vector<1x8xf32>
    %9 = vector.broadcast %7 : vector<32x1xf32> to vector<32x8xf32>
    %10 = vector.broadcast %8 : vector<1x8xf32> to vector<32x8xf32>
    %11 = arith.mulf %9, %10 : vector<32x8xf32>
    %12 = arith.addf %6, %11 : vector<32x8xf32>
    %c0_3 = arith.constant 0 : index
    %c0_4 = arith.constant 0 : index
    %13 = vector.load %arg3[%c0_3, %c0_4] : memref<32x1xf32, #tpu.memory_space<vmem>>, vector<32x1xf32>
    %14 = vector.broadcast %13 : vector<32x1xf32> to vector<32x8xf32>
    %15 = arith.addf %12, %14 : vector<32x8xf32>
    %16 = math.tanh %15 : vector<32x8xf32>
    %c0_5 = arith.constant 0 : index
    %c0_6 = arith.constant 0 : index
    %17 = vector.load %arg4[%c0_5, %c0_6] : memref<33x32xf32, #tpu.memory_space<vmem>>, vector<33x32xf32>
    %cst = arith.constant dense<0.000000e+00> : vector<33x8xf32>
    %18 = tpu.matmul %17, %16, %cst {dimension_numbers = #tpu.dot_dimension_numbers<[1], [0], [0], [1], [0, 0, 1, 1], [], []>} : vector<33x32xf32>, vector<32x8xf32>, vector<33x8xf32> -> vector<33x8xf32>
    %c0_7 = arith.constant 0 : index
    %c0_8 = arith.constant 0 : index
    %19 = vector.load %arg5[%c0_7, %c0_8] : memref<33x2xf32, #tpu.memory_space<vmem>>, vector<33x2xf32>
    %cst_9 = arith.constant dense<0.000000e+00> : vector<33x8xf32>
    %20 = tpu.matmul %19, %0, %cst_9 {dimension_numbers = #tpu.dot_dimension_numbers<[1], [0], [0], [1], [0, 0, 1, 1], [], []>} : vector<33x2xf32>, vector<2x8xf32>, vector<33x8xf32> -> vector<33x8xf32>
    %21 = arith.addf %18, %20 : vector<33x8xf32>
    %c0_10 = arith.constant 0 : index
    %c0_11 = arith.constant 0 : index
    %22 = vector.load %arg6[%c0_10, %c0_11] : memref<33x1xf32, #tpu.memory_space<vmem>>, vector<33x1xf32>
    %23 = vector.broadcast %22 : vector<33x1xf32> to vector<33x8xf32>
    %24 = arith.addf %21, %23 : vector<33x8xf32>
    %25 = vector.extract_strided_slice %24 {offsets = [0, 0], sizes = [32, 8], strides = [1, 1]} : vector<33x8xf32> to vector<32x8xf32>
    %26 = math.tanh %25 : vector<32x8xf32>
    %27 = vector.extract_strided_slice %24 {offsets = [32, 0], sizes = [1, 8], strides = [1, 1]} : vector<33x8xf32> to vector<1x8xf32>
    %c0_12 = arith.constant 0 : index
    %c0_13 = arith.constant 0 : index
    %28 = vector.load %arg7[%c0_12, %c0_13] : memref<1x32xf32, #tpu.memory_space<vmem>>, vector<1x32xf32>
    %cst_14 = arith.constant dense<0.000000e+00> : vector<1x8xf32>
    %29 = tpu.matmul %28, %26, %cst_14 {dimension_numbers = #tpu.dot_dimension_numbers<[1], [0], [0], [1], [0, 0, 1, 1], [], []>} : vector<1x32xf32>, vector<32x8xf32>, vector<1x8xf32> -> vector<1x8xf32>
    %30 = arith.addf %27, %29 : vector<1x8xf32>
    %31 = arith.negf %30 : vector<1x8xf32>
    %32 = math.exp %31 : vector<1x8xf32>
    %cst_15 = arith.constant 1.000000e+00 : f32
    %33 = vector.broadcast %cst_15 : f32 to vector<1x8xf32>
    %34 = arith.addf %33, %32 : vector<1x8xf32>
    %35 = arith.divf %33, %34 : vector<1x8xf32>
    %c0_16 = arith.constant 0 : index
    %c0_17 = arith.constant 0 : index
    %36 = vector.load %arg8[%c0_16, %c0_17] : memref<1x8xf32, #tpu.memory_space<vmem>>, vector<1x8xf32>
    tpu.vector_store %arg8[%c0_16, %c0_17], %35 {strides = array<i32>} : memref<1x8xf32, #tpu.memory_space<vmem>>, vector<1x8xf32>,
    return
  }
  func.func @transform_0(%arg0: i32) -> (i32, i32) {
    %c0_i32 = arith.constant 0 : i32
    %c0_i32_0 = arith.constant 0 : i32
    return %c0_i32, %arg0 : i32, i32
  }
  func.func @transform_1(%arg0: i32) -> (i32, i32) {
    %c0_i32 = arith.constant 0 : i32
    %c0_i32_0 = arith.constant 0 : i32
    %c0_i32_1 = arith.constant 0 : i32
    return %c0_i32, %c0_i32_0 : i32, i32
  }
  func.func @transform_2(%arg0: i32) -> (i32, i32) {
    %c0_i32 = arith.constant 0 : i32
    %c0_i32_0 = arith.constant 0 : i32
    %c0_i32_1 = arith.constant 0 : i32
    return %c0_i32, %c0_i32_0 : i32, i32
  }
  func.func @transform_3(%arg0: i32) -> (i32, i32) {
    %c0_i32 = arith.constant 0 : i32
    %c0_i32_0 = arith.constant 0 : i32
    %c0_i32_1 = arith.constant 0 : i32
    return %c0_i32, %c0_i32_0 : i32, i32
  }
  func.func @transform_4(%arg0: i32) -> (i32, i32) {
    %c0_i32 = arith.constant 0 : i32
    %c0_i32_0 = arith.constant 0 : i32
    %c0_i32_1 = arith.constant 0 : i32
    return %c0_i32, %c0_i32_0 : i32, i32
  }
  func.func @transform_5(%arg0: i32) -> (i32, i32) {
    %c0_i32 = arith.constant 0 : i32
    %c0_i32_0 = arith.constant 0 : i32
    %c0_i32_1 = arith.constant 0 : i32
    return %c0_i32, %c0_i32_0 : i32, i32
  }
  func.func @transform_6(%arg0: i32) -> (i32, i32) {
    %c0_i32 = arith.constant 0 : i32
    %c0_i32_0 = arith.constant 0 : i32
    %c0_i32_1 = arith.constant 0 : i32
    return %c0_i32, %c0_i32_0 : i32, i32
  }
  func.func @transform_7(%arg0: i32) -> (i32, i32) {
    %c0_i32 = arith.constant 0 : i32
    %c0_i32_0 = arith.constant 0 : i32
    return %c0_i32, %arg0 : i32, i32
  }
}

</mosaic_0001>

<bundles_post_ra>
// kernel: densenet_forward.1
= control target key start
LH: loop header
LB: loop body
LE: loop exit
PB: predicated region body
PF: predicated region fallthrough
CT: control target
= control target key end

     0   :  { %v620_v2 = vmov 1   ;;  %v621_v3 = vmov 0   ;;  %s780_s0 = inlined_call_operand.vmem [shape: f32[2,8], index: 0, kind: input, shape index: {}]   ;;  %s781_s1 = inlined_call_operand.vmem [shape: f32[32,2], index: 1, kind: input, shape index: {}]   ;;  %s782_s2 = inlined_call_operand.vmem [shape: f32[32,1], index: 2, kind: input, shape index: {}]   ;;  %s783_s3 = inlined_call_operand.vmem [shape: f32[33,32], index: 3, kind: input, shape index: {}]   ;;  %s784_s4 = inlined_call_operand.vmem [shape: f32[33,2], index: 4, kind: input, shape index: {}]   ;;  %s785_s5 = inlined_call_operand.vmem [shape: f32[33,1], index: 5, kind: input, shape index: {}]   ;;  %s786_s6 = inlined_call_operand.vmem [shape: f32[1,32], index: 6, kind: input, shape index: {}]   ;;  %s787_s7 = inlined_call_operand.hbm [shape: f32[1,8], index: 7, kind: output, shape index: {}]  }
   0x1   :  { %v31_v0 = vld [vmem:[%s781_s1 + $0x18] sm:$0xff]  ;;  %v30_v1 = vld [vmem:[%s781_s1 + $0x10] sm:$0xff]  ;;  %571 = vset.pattern.permute.xlu0 %v620_v2  ;;  %572 = vset.pattern.permute.xlu1 %v621_v3  ;;  %v29_v4 = vld [vmem:[%s781_s1 + $0x8] sm:$0xff] }
   0x2   :  { %73 = vperm.xlu0 %571, %v31_v0   ;;  %44 = vperm.xlu1 %572, %v30_v1  }
   0x3   :  { %12 = vsyncpa [#allocation3], 0  ;;  %v28_v5 = vld [vmem:[%s781_s1] sm:$0xff]  ;;  %v91_v6 = vld [vmem:[%s782_s2 + $0x18] sm:$0xff]  ;;  %v622_v12 = vmov 0.0   ;;  %vm146_vm0 = vcmask 1041408   ;;  %v52_v22 = vlaneseq }
   0x4   :  { %v89_v7 = vld [vmem:[%s782_s2 + $0x8] sm:$0xff]  ;;  %v349_v8 = vld [vmem:[%s785_s5 + $0x18] sm:$0xff]  ;;  %v90_v9 = vld [vmem:[%s782_s2 + $0x10] sm:$0xff]  ;;  %532 = vmatprep.subr.mxu1 %v622_v12  ;;  %515 = vmatprep.subr.mxu0 %v622_v12  ;;  %vm623_vm1 = vmmov 0   ;;  %vm130_vm2 = vcmask 15360   ;;  %vm240_vm3 = vcmask 261120  }
   0x5   :  { %v347_v10 = vld [vmem:[%s785_s5 + $0x8] sm:$0xff]  ;;  %v88_v11 = vld [vmem:[%s782_s2] sm:$0xff]  ;;  %v348_v14 = vld [vmem:[%s785_s5 + $0x10] sm:$0xff]  ;;  %517 = vmatprep.mubr.msk.f32.mxu0 %vm623_vm1, %v622_v12  ;;  %540 = vmatprep.mubr.msk.f32.mxu1 %vm623_vm1, %v622_v12  ;;  %v53_v23 = vshrl.u32 %v52_v22, 7  ;;  %s624_s21 = smov [#allocation2]   ;;  %vm466_vm4 = vcmask 57344  }
   0x6   :  { %573 = vset.pattern.permute.xlu1 %v620_v2  ;;  %65 = vperm.xlu0 %571, %v29_v4   ;;  %v350_v13 = vld [vmem:[%s785_s5 + $0x20] sm:$0x1]  ;;  %v126_v18 = vld [vmem:[%s784_s4 + $0x8] sm:$0xff]  ;;  %v127_v19 = vld [vmem:[%s784_s4 + $0x10] sm:$0xff]  ;;  %s474_s22 = sshll.u32 %s624_s21, 4  ;;  %s475_s22 = int_to_ptr.vmem [resolvable:$true] %s474_s22 }
   0x7   :  { %69 = vperm.xlu1 %573, %v30_v1   ;;  %v346_v15 = vld [vmem:[%s785_s5] sm:$0xff]  ;;  %v128_v20 = vld [vmem:[%s784_s4 + $0x18] sm:$0xff]  ;;  %v78_v26 = vsub.s32 1, %v53_v23  ;;  %v54_v27 = vsub.s32 0, %v53_v23  ;;  %v121_v61 = vld [vmem:[%s783_s3 + $0x8] sm:$0xff]  ;;  %s602_s23 = scalar_lea.vmem %s475_s22, 32  ;;  %p603_p1 = scmp.lt.s32.totalorder %s475_s22, %s475_s22 }
   0x8   :  { %v27_v16 = vld [vmem:[%s780_s0] sm:$0x3]  ;;  %v122_v62 = vld [vmem:[%s783_s3 + $0x10] sm:$0xff]  ;;  %v123_v63 = vld [vmem:[%s783_s3 + $0x18] sm:$0xff] }
   0x9   :  { %516 = vmatpush3.msk.msra.mxu0 %vm146_vm0, %v27_v16  ;;  %v125_v17 = vld [vmem:[%s784_s4] sm:$0xff]  ;;  %v79_v30 = vrot.slane %v27_v16, %v78_v26  ;;  %v55_v31 = vrot.slane %v27_v16, %v54_v27 }
   0xa   :  { %575 = vset.pattern.permute.xlu0 %v621_v3  ;;  %518 = vmatmul.mubr.msk.f32.vlgmr.msra.gmra.mxu0 %vm130_vm2, %v125_v17  ;;  %v129_v21 = vld [vmem:[%s784_s4 + $0x20] sm:$0x1] }
   0xb   :  { %574 = vset.pattern.permute.xlu1 %v621_v3  ;;  %49 = vperm.xlu0 %575, %v31_v0   ;;  %v120_v59 = vld [vmem:[%s783_s3] sm:$0xff] }
   0xc   :  { %39 = vperm.xlu1 %574, %v29_v4   ;;  %520 = vmatprep.mubr.msk.f32.mxu0 %vm623_vm1, %v622_v12  ;;  %v124_v0 = vld [vmem:[%s783_s3 + $0x20] sm:$0x1] }
   0xd   :  { %555 = vmatprep.subr.mxu0 %v622_v12 }
   0xe   :  { %521 = vmatmul.mubr.msk.f32.gmra.mxu0 %vm130_vm2, %v126_v18 }
   0xf   :  { %34 = vperm.xlu0 %575, %v28_v5   ;;  %523 = vmatprep.mubr.msk.f32.mxu0 %vm623_vm1, %v622_v12 }
  0x10   :  { %109 = vperm.xlu1 %574, %v91_v6  }
  0x12   :  { %524 = vmatmul.mubr.msk.f32.gmra.mxu0 %vm130_vm2, %v127_v19 }
  0x13   :  { %99 = vperm.xlu0 %575, %v89_v7   ;;  %526 = vmatprep.mubr.msk.f32.mxu0 %vm623_vm1, %v622_v12 }
  0x14   :  { %576 = vset.pattern.permute.xlu1 %v620_v2 }
  0x15   :  { %61 = vperm.xlu1 %576, %v28_v5  }
  0x16   :  { %527 = vmatmul.mubr.msk.f32.gmra.mxu0 %vm130_vm2, %v128_v20 }
  0x17   :  { %368 = vperm.xlu0 %575, %v349_v8   ;;  %529 = vmatprep.mubr.msk.f32.mxu0 %vm623_vm1, %v622_v12 }
  0x19   :  { %577 = vset.pattern.permute.xlu1 %v621_v3 }
  0x1a   :  { %104 = vperm.xlu1 %577, %v90_v9   ;;  %530 = vmatmul.mubr.msk.f32.gmra.mxu0 %vm130_vm2, %v129_v21 }
  0x1b   :  { %358 = vperm.xlu0 %575, %v347_v10   ;;  %563 = vmatprep.mubr.msk.f32.mxu0 %vm623_vm1, %v622_v12 }
  0x1e   :  { %94 = vperm.xlu1 %577, %v88_v11  }
  0x1f   :  { %373 = vperm.xlu0 %575, %v350_v13  }
  0x22   :  { %363 = vperm.xlu1 %577, %v348_v14  }
  0x26   :  { %353 = vperm.xlu1 %577, %v346_v15  }
  0x7d   :  { %v45_v24 = vpop.permute.xlu1 %44  ;;  %v74_v25 = vpop.permute.xlu0 %73 }
  0x7e   :  { %v83_v32 = vmul.f32 %v79_v30, %v74_v25  ;;  %v58_v44 = vmul.f32 %v55_v31, %v45_v24 }
  0x81   :  { %v66_v28 = vpop.permute.xlu0 %65 }
  0x82   :  { %v70_v29 = vpop.permute.xlu1 %69  ;;  %v81_v41 = vmul.f32 %v79_v30, %v66_v28 }
  0x83   :  { %v82_v40 = vmul.f32 %v79_v30, %v70_v29 }
  0x85   :  { %v86_v49 = vadd.f32 %v82_v40, %v58_v44 }
  0x86   :  { %v50_v33 = vpop.permute.xlu0 %49 }
  0x87   :  { %v59_v34 = vmul.f32 %v55_v31, %v50_v33  ;;  %v40_v35 = vpop.permute.xlu1 %39 }
  0x88   :  { %v57_v42 = vmul.f32 %v55_v31, %v40_v35 }
  0x89   :  { %v87_v36 = vadd.f32 %v83_v32, %v59_v34 }
  0x8a   :  { %v35_v39 = vpop.permute.xlu0 %34  ;;  %v85_v47 = vadd.f32 %v81_v41, %v57_v42 }
  0x8b   :  { %v110_v37 = vpop.permute.xlu1 %109  ;;  %v56_v46 = vmul.f32 %v55_v31, %v35_v39 }
  0x8c   :  { %v115_v38 = vadd.f32 %v110_v37, %v87_v36  ;;  %v385_v37 = vld [vmem:[%s786_s6] sm:$0x1]  ;;  %s598_s6 = scalar_lea.vmem %s475_s22, 16 }
  0x8d   :  { %p599_p0 = scmp.ne.s32.totalorder %s475_s22, %s598_s6  ;;  %p604_p2 = scmp.lt.s32.totalorder %s602_s23, %s598_s6 }
  0x8e   :  { %578 = vtanh.f32 %v115_v38  ;;  %v100_v45 = vpop.permute.xlu0 %99 }
  0x8f   :  { %v113_v51 = vadd.f32 %v100_v45, %v85_v47  ;;  %p605_p3 = por %p604_p2, %p603_p1 }
  0x90   :  { %v62_v43 = vpop.permute.xlu1 %61 }
  0x91   :  { %v80_v48 = vmul.f32 %v79_v30, %v62_v43  ;;  %p606_p4 = pnand %p605_p3, %p599_p0 }
  0x92   :  { %v369_v17 = vpop.permute.xlu0 %368 }
  0x93   :  { %v84_v53 = vadd.f32 %v80_v48, %v56_v46 }
  0x95   :  { %v105_v50 = vpop.permute.xlu1 %104 }
  0x96   :  { %v114_v52 = vadd.f32 %v105_v50, %v86_v49  ;;  %v359_v28 = vpop.permute.xlu0 %358 }
  0x98   :  { %580 = vtanh.f32 %v114_v52 }
  0x99   :  { %v95_v54 = vpop.permute.xlu1 %94  ;;  %582 = vtanh.f32 %v113_v51 }
  0x9a   :  { %v112_v55 = vadd.f32 %v95_v54, %v84_v53  ;;  %v374_v40 = vpop.permute.xlu0 %373 }
  0x9b   :  { %v579_v56 = vpop.eup %578 }
  0x9c   :  { %584 = vtanh.f32 %v112_v55  ;;  %533 = vmatpush3.msra.mxu1 %v579_v56 }
  0x9d   :  { %534 = vmatprep.subr.mxu1 %v622_v12  ;;  %v364_v20 = vpop.permute.xlu1 %363 }
  0xa1   :  { %v354_v31 = vpop.permute.xlu1 %353 }
  0xa5   :  { %v581_v57 = vpop.eup %580 }
  0xa6   :  { %535 = vmatpush3.msra.mxu1 %v581_v57  ;;  %v583_v58 = vpop.eup %582 }
  0xa7   :  { %536 = vmatprep.subr.mxu1 %v622_v12 }
  0xa8   :  { %537 = vmatpush3.msra.mxu1 %v583_v58 }
  0xa9   :  { %v585_v60 = vpop.eup %584  ;;  %538 = vmatprep.subr.mxu1 %v622_v12 }
  0xaa   :  { %539 = vmatpush3.msra.mxu1 %v585_v60 }
  0xab   :  { %541 = vmatmul.mubr.msk.f32.vlgmr.msra.gmra.mxu1 %vm240_vm3, %v120_v59 }
  0xac   :  { %543 = vmatprep.mubr.msk.f32.mxu1 %vm623_vm1, %v622_v12 }
  0xaf   :  { %544 = vmatmul.mubr.msk.f32.gmra.mxu1 %vm240_vm3, %v121_v61 }
  0xb0   :  { %546 = vmatprep.mubr.msk.f32.mxu1 %vm623_vm1, %v622_v12 }
  0xb3   :  { %547 = vmatmul.mubr.msk.f32.gmra.mxu1 %vm240_vm3, %v122_v62 }
  0xb4   :  { %549 = vmatprep.mubr.msk.f32.mxu1 %vm623_vm1, %v622_v12 }
  0xb7   :  { %550 = vmatmul.mubr.msk.f32.gmra.mxu1 %vm240_vm3, %v123_v63 }
  0xb8   :  { %552 = vmatprep.mubr.msk.f32.mxu1 %vm623_vm1, %v622_v12 }
  0xbb   :  { %553 = vmatmul.mubr.msk.f32.gmra.mxu1 %vm240_vm3, %v124_v0 }
  0xca   :  { %v216_v1 = vpop.f32.mrf.mxu0 }
  0xcc   :  { %v519_v2 = vpop.f32.mrf.mxu0 }
  0xce   :  { %v221_v3 = vpop.f32.mrf.mxu0 }
  0xd0   :  { %v522_v4 = vpop.f32.mrf.mxu0 }
  0xd2   :  { %v226_v5 = vpop.f32.mrf.mxu0 }
  0xd4   :  { %v525_v6 = vpop.f32.mrf.mxu0 }
  0xd6   :  { %v231_v7 = vpop.f32.mrf.mxu0 }
  0xd8   :  { %v528_v8 = vpop.f32.mrf.mxu0 }
  0xda   :  { %v236_v9 = vpop.f32.mrf.mxu0 }
  0xdc   :  { %v531_v10 = vpop.f32.mrf.mxu0 }
 0x16b   :  { %v322_v11 = vpop.f32.mrf.mxu1 }
 0x16c   :  { %v323_v25 = vadd.f32 %v322_v11, %v216_v1 }
 0x16d   :  { %v542_v13 = vpop.f32.mrf.mxu1 }
 0x16e   :  { %v376_v33 = vadd.f32 %v354_v31, %v323_v25 }
 0x16f   :  { %v327_v14 = vpop.f32.mrf.mxu1 }
 0x170   :  { %v328_v22 = vadd.f32 %v327_v14, %v221_v3 }
 0x171   :  { %v545_v15 = vpop.f32.mrf.mxu1 }
 0x172   :  { %v377_v30 = vadd.f32 %v359_v28, %v328_v22 }
 0x173   :  { %v332_v16 = vpop.f32.mrf.mxu1 }
 0x174   :  { %v333_v19 = vadd.f32 %v332_v16, %v226_v5 }
 0x175   :  { %v548_v18 = vpop.f32.mrf.mxu1 }
 0x176   :  { %v378_v26 = vadd.f32 %v364_v20, %v333_v19 }
 0x177   :  { %v337_v21 = vpop.f32.mrf.mxu1 }
 0x178   :  { %v338_v23 = vadd.f32 %v337_v21, %v231_v7 }
 0x179   :  { %v551_v24 = vpop.f32.mrf.mxu1 }
 0x17a   :  { %v379_v27 = vadd.f32 %v369_v17, %v338_v23 }
 0x17b   :  { %v342_v29 = vpop.f32.mrf.mxu1 }
 0x17c   :  { %586 = vtanh.f32 %v379_v27  ;;  %v343_v39 = vadd.f32 %v342_v29, %v236_v9 }
 0x17d   :  { %v554_v32 = vpop.f32.mrf.mxu1  ;;  %588 = vtanh.f32 %v378_v26 }
 0x17e   :  { %590 = vtanh.f32 %v377_v30  ;;  %v380_v41 = vadd.f32 %v374_v40, %v343_v39 }
 0x17f   :  { %592 = vtanh.f32 %v376_v33 }
 0x189   :  { %v587_v34 = vpop.eup %586 }
 0x18a   :  { %556 = vmatpush3.msra.mxu0 %v587_v34  ;;  %v589_v35 = vpop.eup %588 }
 0x18b   :  { %557 = vmatprep.subr.mxu0 %v622_v12  ;;  %v591_v36 = vpop.eup %590 }
 0x18c   :  { %558 = vmatpush3.msra.mxu0 %v589_v35  ;;  %v593_v38 = vpop.eup %592 }
 0x18d   :  { %559 = vmatprep.subr.mxu0 %v622_v12 }
 0x18e   :  { %560 = vmatpush3.msra.mxu0 %v591_v36 }
 0x18f   :  { %561 = vmatprep.subr.mxu0 %v622_v12 }
 0x190   :  { %562 = vmatpush3.msra.mxu0 %v593_v38 }
 0x191   :  { %564 = vmatmul.mubr.msk.f32.vlgmr.msra.gmra.mxu0 %vm240_vm3, %v385_v37 }
 0x251   :  { %v455_v42 = vpop.f32.mrf.mxu0 }
 0x252   :  { %v459_v43 = vadd.f32 %v455_v42, %v380_v41 }
 0x253   :  { %v565_v44 = vpop.f32.mrf.mxu0 }
 0x254   :  { %v494_v45 = vmul.f32 -1.442695, %v459_v43 }
 0x256   :  { %594 = vpow2.f32 %v494_v45 }
 0x263   :  { %v595_v46 = vpop.eup %594 }
 0x264   :  { %v463_v47 = vadd.f32 1.0, %v595_v46 }
 0x266   :  { %596 = vrcp.f32 %v463_v47 }
 0x273   :  { %v597_v48 = vpop.eup %596 }
 0x274   :  { %467 = vst.msk [vmem:[#allocation2] sm:$0x1] %vm466_vm4, %v597_v48 }
 0x275   :  { %609 = shalt.err (!%p606_p4)
}
 0x276   :  { %477 = dma.vmem_to_hbm [thread:$0]  %s475_s22, 16, %s787_s7, [#allocation3]  }
 0x277   :  { %618 = dma.done.wait [#allocation3], 16  }
 0x278   :  { %619 = vsyncadd [#allocation3], 4294967280 }
 0x279   :  { %481 = vsyncpa [#allocation3], 1 }

</bundles_post_ra>
